<compile_context>
chip_gen: v7x
topology: tpu7x:2x2x1
jax: 0.10.0
libtpu: 0.0.40
codegen_flags: <defaults>
</compile_context>

<pallas_src>
import functools

import numpy as np
import jax
import jax.numpy as jnp
from jax.experimental import pallas as pl
from jax.experimental.pallas import tpu as pltpu

IN_DIM = 32
MEM_DIM = 32


# --------------------------------------------------------------------------- kernel
def _tree_lstm_kernel(mem_dim, max_children, num_nodes,
                      cidx_ref,              # SMEM (num_nodes*max_children,) int32
                      xw_ref, wh_ref,        # VMEM resident: (num_nodes, 4M), (2M, 4M)
                      state_ref):            # VMEM resident output: (num_nodes+1, 2M), rows [c|h]
    sentinel = num_nodes                     # always-zero state row for missing children

    state_ref[pl.ds(sentinel, 1), :] = jnp.zeros((1, 2 * mem_dim), jnp.float32)

    @pl.loop(0, num_nodes)                   # children-first topological order
    def _node(n):
        base = n * max_children
        # Gather child [c|h] rows as values (no per-child scratch stores).
        rows = [state_ref[pl.ds(cidx_ref[base + k], 1), :]
                for k in range(max_children)]
        ch = jnp.concatenate(rows, axis=0)                                   # (MC, 2M)
        ch_c = ch[:, :mem_dim]                                               # (MC, M)

        # h-recurrence: the top (c) half of wh_ref is zero, so this is exactly
        # child_h @ [Wiouh | Wfh]  -> one small MXU pass per node.
        z = jnp.dot(ch, wh_ref[...], preferred_element_type=jnp.float32)     # (MC, 4M)
        xw = xw_ref[pl.ds(n, 1), :]                                          # (1, 4M), biases folded

        # iou uses sum over children's h; padded (sentinel) children contribute zero.
        iou = xw[:, :3 * mem_dim] + jnp.sum(z[:, :3 * mem_dim], axis=0, keepdims=True)
        i = jax.nn.sigmoid(iou[:, :mem_dim])
        o = jax.nn.sigmoid(iou[:, mem_dim:2 * mem_dim])
        u = jnp.tanh(iou[:, 2 * mem_dim:])
        # per-child forget gates; padded children's f multiplies zero child_c -> harmless
        f = jax.nn.sigmoid(z[:, 3 * mem_dim:] + xw[:, 3 * mem_dim:])         # (MC, M)

        c = i * u + jnp.sum(f * ch_c, axis=0, keepdims=True)
        h = o * jnp.tanh(c)
        state_ref[pl.ds(n, 1), :] = jnp.concatenate([c, h], axis=1)          # single store / node


@jax.jit
def tree_lstm_states(w_x, b_x, w_h_packed, x_topo, child_idx_flat):
    """Runs the whole ChildSum-TreeLSTM in one pallas_call (single grid step).

    Returns (c_all, h_all): per-node states in topological (children-first) order."""
    num_nodes = x_topo.shape[0]
    two_m, four_m = w_h_packed.shape
    mem_dim = two_m // 2
    max_children = child_idx_flat.shape[0] // num_nodes

    # Hoisted, fully parallel, lane-dense x-projection (all four Linear biases folded in).
    xw = x_topo @ w_x + b_x                                                  # (num_nodes, 4M)

    kernel = functools.partial(_tree_lstm_kernel, mem_dim, max_children, num_nodes)

    state = pl.pallas_call(
        kernel,
        out_shape=jax.ShapeDtypeStruct((num_nodes + 1, two_m), jnp.float32),
        grid_spec=pltpu.PrefetchScalarGridSpec(
            num_scalar_prefetch=1,                    # child-index table lives in SMEM
            grid=(1,),                                # single step: node walk is in-kernel
            in_specs=[
                # constant block index => fetched into VMEM once, resident for the call
                pl.BlockSpec((num_nodes, four_m), lambda i, cidx: (0, 0)),
                pl.BlockSpec((two_m, four_m), lambda i, cidx: (0, 0)),
            ],
            out_specs=pl.BlockSpec((num_nodes + 1, two_m), lambda i, cidx: (0, 0)),
        ),
        compiler_params=pltpu.CompilerParams(
            dimension_semantics=("arbitrary",),
        ),
    )(child_idx_flat, xw, w_h_packed)

    return state[:num_nodes, :mem_dim], state[:num_nodes, mem_dim:]


# --------------------------------------------------------------------------- host-side tree prep
class Tree:
    def __init__(self, node_id, children=()):
        self.id = node_id
        self.children = list(children)
        self.num_children = len(self.children)
        self.state = None


def flatten_tree(root):
    """Post-order flattening: every child appears before its parent."""
    order = []

    def visit(node):
        for ch in node.children:
            visit(ch)
        order.append(node)

    visit(root)
    return order


def build_tables(order, max_children):
    num_nodes = len(order)
    pos = {id(node): t for t, node in enumerate(order)}
    sentinel = num_nodes                            # extra always-zero state row
    cidx = np.full((num_nodes, max_children), sentinel, dtype=np.int32)
    rows = np.empty((num_nodes,), dtype=np.int32)
    for t, node in enumerate(order):
        rows[t] = node.id
        for k, ch in enumerate(node.children):
            cidx[t, k] = pos[id(ch)]
    return cidx.reshape(-1), rows                   # flat 1-D table avoids SMEM 2-D padding


# --------------------------------------------------------------------------- params
def init_params(key):
    """torch.nn.Linear default init U(-k, k), k = 1/sqrt(fan_in).
    Weights stored transposed as (in, out) so y = x @ W + b == torch's x @ W.T + b."""
    def linear(k, fan_in, fan_out):
        kw, kb = jax.random.split(k)
        bound = 1.0 / np.sqrt(fan_in)
        w = jax.random.uniform(kw, (fan_in, fan_out), jnp.float32, -bound, bound)
        b = jax.random.uniform(kb, (1, fan_out), jnp.float32, -bound, bound)
        return w, b

    k1, k2, k3, k4 = jax.random.split(key, 4)
    wioux, bioux = linear(k1, IN_DIM, 3 * MEM_DIM)
    wiouh, biouh = linear(k2, MEM_DIM, 3 * MEM_DIM)
    wfx, bfx = linear(k3, IN_DIM, MEM_DIM)
    wfh, bfh = linear(k4, MEM_DIM, MEM_DIM)
    return dict(wioux=wioux, bioux=bioux, wiouh=wiouh, biouh=biouh,
                wfx=wfx, bfx=bfx, wfh=wfh, bfh=bfh)


def pack_params(params):
    """Pack for the kernel:
       w_x        (IN, 4M) = [Wioux | Wfx]            -> hoisted x-projection pre-pass
       b_x        (1,  4M) = [bioux+biouh | bfx+bfh]  -> all biases folded into pre-pass
       w_h_packed (2M, 4M) = [[0], [Wiouh | Wfh]]     -> c-half zero; state rows are [c|h]"""
    w_x = jnp.concatenate([params["wioux"], params["wfx"]], axis=1)
    b_x = jnp.concatenate([params["bioux"] + params["biouh"],
                           params["bfx"] + params["bfh"]], axis=1)
    w_h = jnp.concatenate([params["wiouh"], params["wfh"]], axis=1)          # (M, 4M)
    w_h_packed = jnp.concatenate([jnp.zeros_like(w_h), w_h], axis=0)         # (2M, 4M)
    return w_x, b_x, w_h_packed


# --------------------------------------------------------------------------- pure-JAX reference
def node_forward_ref(params, x, child_c, child_h):
    h_sum = jnp.sum(child_h, axis=0, keepdims=True)
    iou = (x @ params["wioux"] + params["bioux"]
           + h_sum @ params["wiouh"] + params["biouh"])
    i = jax.nn.sigmoid(iou[:, :MEM_DIM])
    o = jax.nn.sigmoid(iou[:, MEM_DIM:2 * MEM_DIM])
    u = jnp.tanh(iou[:, 2 * MEM_DIM:])
    f = jax.nn.sigmoid(child_h @ params["wfh"] + params["bfh"]
                       + x @ params["wfx"] + params["bfx"])
    c = i * u + jnp.sum(f * child_c, axis=0, keepdims=True)
    h = o * jnp.tanh(c)
    return c, h


def tree_lstm_ref(params, tree, inputs):
    states = {}

    def visit(node):
        for ch in node.children:
            visit(ch)
        if node.num_children == 0:
            cc = jnp.zeros((1, MEM_DIM), jnp.float32)
            chh = jnp.zeros((1, MEM_DIM), jnp.float32)
        else:
            cc = jnp.concatenate([states[id(ch)][0] for ch in node.children], axis=0)
            chh = jnp.concatenate([states[id(ch)][1] for ch in node.children], axis=0)
        states[id(node)] = node_forward_ref(params, inputs[node.id][None, :], cc, chh)
        return states[id(node)]

    root_state = visit(tree)
    return root_state, states


# --------------------------------------------------------------------------- demo
if __name__ == "__main__":
    key = jax.random.PRNGKey(0)
    kp, kx = jax.random.split(key)
    params = init_params(kp)

    # small deterministic tree: 7 nodes
    #        0
    #      / | \
    #     1  2  3
    #    / \     \
    #   4   5     6
    tree = Tree(0, [
        Tree(1, [Tree(4), Tree(5)]),
        Tree(2),
        Tree(3, [Tree(6)]),
    ])
    order = flatten_tree(tree)
    num_nodes = len(order)
    # guard against an all-leaf batch producing a zero-width child table
    max_children = max(1, max(node.num_children for node in order))

    inputs = jax.random.normal(kx, (num_nodes, IN_DIM), jnp.float32)

    child_idx_flat, input_rows = build_tables(order, max_children)
    x_topo = inputs[input_rows]                      # node inputs in topological order

    w_x, b_x, w_h_packed = pack_params(params)

    c_all, h_all = tree_lstm_states(w_x, b_x, w_h_packed, x_topo,
                                    jnp.asarray(child_idx_flat))
    jax.block_until_ready((c_all, h_all))

    # attach per-node states like the torch module's tree.state; root is last in topo order
    for t, node in enumerate(order):
        node.state = (c_all[t:t + 1], h_all[t:t + 1])
    root_c, root_h = tree.state

    # numerical sanity check against a pure-JAX port of the original recursion
    (c_ref_root, h_ref_root), ref_states = tree_lstm_ref(params, tree, inputs)
    for t, node in enumerate(order):
        rc, rh = ref_states[id(node)]
        assert jnp.allclose(c_all[t:t + 1], rc, atol=1e-4, rtol=1e-4), f"c mismatch at node {node.id}"
        assert jnp.allclose(h_all[t:t + 1], rh, atol=1e-4, rtol=1e-4), f"h mismatch at node {node.id}"
    assert jnp.allclose(root_c, c_ref_root, atol=1e-4, rtol=1e-4)
    assert jnp.allclose(root_h, h_ref_root, atol=1e-4, rtol=1e-4)

    print("KERNEL_OK")
</pallas_src>

<mosaic_0001>
module attributes {stable_mosaic.version = 11 : i64} {
  func.func @_tree_lstm_kernel(%arg0: i32, %arg1: memref<21xi32, #tpu.memory_space<smem>>, %arg2: memref<7x128xf32, #tpu.memory_space<vmem>>, %arg3: memref<64x128xf32, #tpu.memory_space<vmem>>, %arg4: memref<8x64xf32, #tpu.memory_space<vmem>>) attributes {dimension_semantics = [#tpu.dimension_semantics<arbitrary>], iteration_bounds = array<i64: 1>, scalar_prefetch = 1 : i64, scratch_operands = 0 : i64, tpu.core_type = #tpu.core_type<tc>, window_params = [{pipeline_mode = #tpu.pipeline_mode<synchronous>, transform_indices = @transform_0, window_bounds = array<i64: 7, 128>}, {pipeline_mode = #tpu.pipeline_mode<synchronous>, transform_indices = @transform_1, window_bounds = array<i64: 64, 128>}, {pipeline_mode = #tpu.pipeline_mode<synchronous>, transform_indices = @transform_2, window_bounds = array<i64: 8, 64>}]} {
    %cst = arith.constant 0.000000e+00 : f32
    %0 = vector.broadcast %cst : f32 to vector<1x64xf32>
    %c7 = arith.constant 7 : index
    %c0 = arith.constant 0 : index
    %1 = vector.load %arg4[%c7, %c0] : memref<8x64xf32, #tpu.memory_space<vmem>>, vector<1x64xf32>
    tpu.vector_store %arg4[%c7, %c0], %0 {strides = array<i32>} : memref<8x64xf32, #tpu.memory_space<vmem>>, vector<1x64xf32>,
    %c0_i32 = arith.constant 0 : i32
    %c7_i32 = arith.constant 7 : i32
    %2 = arith.addi %c0_i32, %c7_i32 : i32
    %c1_i32 = arith.constant 1 : i32
    scf.for %arg5 = %c0_i32 to %2 step %c1_i32  : i32 {
      %c1_i32_1 = arith.constant 1 : i32
      %3 = arith.muli %arg5, %c1_i32_1 : i32
      %c0_i32_2 = arith.constant 0 : i32
      %4 = arith.addi %c0_i32_2, %3 : i32
      %c3_i32 = arith.constant 3 : i32
      %5 = arith.muli %4, %c3_i32 : i32
      %c0_i32_3 = arith.constant 0 : i32
      %6 = arith.addi %5, %c0_i32_3 : i32
      %7 = arith.index_cast %6 : i32 to index
      %8 = memref.load %arg1[%7] : memref<21xi32, #tpu.memory_space<smem>>
      %9 = arith.index_cast %8 : i32 to index
      %c0_4 = arith.constant 0 : index
      %10 = vector.load %arg4[%9, %c0_4] : memref<8x64xf32, #tpu.memory_space<vmem>>, vector<1x64xf32>
      %c1_i32_5 = arith.constant 1 : i32
      %11 = arith.addi %5, %c1_i32_5 : i32
      %12 = arith.index_cast %11 : i32 to index
      %13 = memref.load %arg1[%12] : memref<21xi32, #tpu.memory_space<smem>>
      %14 = arith.index_cast %13 : i32 to index
      %c0_6 = arith.constant 0 : index
      %15 = vector.load %arg4[%14, %c0_6] : memref<8x64xf32, #tpu.memory_space<vmem>>, vector<1x64xf32>
      %c2_i32 = arith.constant 2 : i32
      %16 = arith.addi %5, %c2_i32 : i32
      %17 = arith.index_cast %16 : i32 to index
      %18 = memref.load %arg1[%17] : memref<21xi32, #tpu.memory_space<smem>>
      %19 = arith.index_cast %18 : i32 to index
      %c0_7 = arith.constant 0 : index
      %20 = vector.load %arg4[%19, %c0_7] : memref<8x64xf32, #tpu.memory_space<vmem>>, vector<1x64xf32>
      %21 = tpu.concatenate %10, %15, %20 in 0 : vector<1x64xf32>, vector<1x64xf32>, vector<1x64xf32> -> vector<3x64xf32>
      %22 = vector.extract_strided_slice %21 {offsets = [0, 0], sizes = [3, 32], strides = [1, 1]} : vector<3x64xf32> to vector<3x32xf32>
      %c0_8 = arith.constant 0 : index
      %c0_9 = arith.constant 0 : index
      %23 = vector.load %arg3[%c0_8, %c0_9] : memref<64x128xf32, #tpu.memory_space<vmem>>, vector<64x128xf32>
      %cst_10 = arith.constant dense<0.000000e+00> : vector<3x128xf32>
      %24 = tpu.matmul %21, %23, %cst_10 {dimension_numbers = #tpu.dot_dimension_numbers<[1], [0], [0], [1], [0, 0, 1, 1], [], []>} : vector<3x64xf32>, vector<64x128xf32>, vector<3x128xf32> -> vector<3x128xf32>
      %25 = arith.index_cast %4 : i32 to index
      %c0_11 = arith.constant 0 : index
      %26 = vector.load %arg2[%25, %c0_11] : memref<7x128xf32, #tpu.memory_space<vmem>>, vector<1x128xf32>
      %27 = vector.extract_strided_slice %26 {offsets = [0, 0], sizes = [1, 96], strides = [1, 1]} : vector<1x128xf32> to vector<1x96xf32>
      %28 = vector.extract_strided_slice %24 {offsets = [0, 0], sizes = [3, 96], strides = [1, 1]} : vector<3x128xf32> to vector<3x96xf32>
      %cst_12 = arith.constant dense<0.000000e+00> : vector<96xf32>
      %29 = vector.multi_reduction <add>, %28, %cst_12 [0] : vector<3x96xf32> to vector<96xf32>
      %30 = vector.shape_cast %29 : vector<96xf32> to vector<1x96xf32>
      %31 = arith.addf %27, %30 : vector<1x96xf32>
      %32 = vector.extract_strided_slice %31 {offsets = [0, 0], sizes = [1, 32], strides = [1, 1]} : vector<1x96xf32> to vector<1x32xf32>
      %33 = arith.negf %32 : vector<1x32xf32>
      %34 = math.exp %33 : vector<1x32xf32>
      %cst_13 = arith.constant 1.000000e+00 : f32
      %35 = vector.broadcast %cst_13 : f32 to vector<1x32xf32>
      %36 = arith.addf %35, %34 : vector<1x32xf32>
      %37 = arith.divf %35, %36 : vector<1x32xf32>
      %38 = vector.extract_strided_slice %31 {offsets = [0, 32], sizes = [1, 32], strides = [1, 1]} : vector<1x96xf32> to vector<1x32xf32>
      %39 = arith.negf %38 : vector<1x32xf32>
      %40 = math.exp %39 : vector<1x32xf32>
      %cst_14 = arith.constant 1.000000e+00 : f32
      %41 = vector.broadcast %cst_14 : f32 to vector<1x32xf32>
      %42 = arith.addf %41, %40 : vector<1x32xf32>
      %43 = arith.divf %41, %42 : vector<1x32xf32>
      %44 = vector.extract_strided_slice %31 {offsets = [0, 64], sizes = [1, 32], strides = [1, 1]} : vector<1x96xf32> to vector<1x32xf32>
      %45 = math.tanh %44 : vector<1x32xf32>
      %46 = vector.extract_strided_slice %24 {offsets = [0, 96], sizes = [3, 32], strides = [1, 1]} : vector<3x128xf32> to vector<3x32xf32>
      %47 = vector.extract_strided_slice %26 {offsets = [0, 96], sizes = [1, 32], strides = [1, 1]} : vector<1x128xf32> to vector<1x32xf32>
      %48 = vector.broadcast %47 : vector<1x32xf32> to vector<3x32xf32>
      %49 = arith.addf %46, %48 : vector<3x32xf32>
      %50 = arith.negf %49 : vector<3x32xf32>
      %51 = math.exp %50 : vector<3x32xf32>
      %cst_15 = arith.constant 1.000000e+00 : f32
      %52 = vector.broadcast %cst_15 : f32 to vector<3x32xf32>
      %53 = arith.addf %52, %51 : vector<3x32xf32>
      %54 = arith.divf %52, %53 : vector<3x32xf32>
      %55 = arith.mulf %37, %45 : vector<1x32xf32>
      %56 = arith.mulf %54, %22 : vector<3x32xf32>
      %cst_16 = arith.constant dense<0.000000e+00> : vector<32xf32>
      %57 = vector.multi_reduction <add>, %56, %cst_16 [0] : vector<3x32xf32> to vector<32xf32>
      %58 = vector.shape_cast %57 : vector<32xf32> to vector<1x32xf32>
      %59 = arith.addf %55, %58 : vector<1x32xf32>
      %60 = math.tanh %59 : vector<1x32xf32>
      %61 = arith.mulf %43, %60 : vector<1x32xf32>
      %62 = tpu.concatenate %59, %61 in 1 : vector<1x32xf32>, vector<1x32xf32> -> vector<1x64xf32>
      %63 = arith.index_cast %4 : i32 to index
      %c0_17 = arith.constant 0 : index
      %64 = vector.load %arg4[%63, %c0_17] : memref<8x64xf32, #tpu.memory_space<vmem>>, vector<1x64xf32>
      tpu.vector_store %arg4[%63, %c0_17], %62 {strides = array<i32>} : memref<8x64xf32, #tpu.memory_space<vmem>>, vector<1x64xf32>,
    }
    %c7_i32_0 = arith.constant 7 : i32
    return
  }
  func.func @transform_0(%arg0: i32, %arg1: memref<21xi32, #tpu.memory_space<smem>>) -> (i32, i32) {
    %c0_i32 = arith.constant 0 : i32
    %c0_i32_0 = arith.constant 0 : i32
    %c0_i32_1 = arith.constant 0 : i32
    return %c0_i32, %c0_i32_0 : i32, i32
  }
  func.func @transform_1(%arg0: i32, %arg1: memref<21xi32, #tpu.memory_space<smem>>) -> (i32, i32) {
    %c0_i32 = arith.constant 0 : i32
    %c0_i32_0 = arith.constant 0 : i32
    %c0_i32_1 = arith.constant 0 : i32
    return %c0_i32, %c0_i32_0 : i32, i32
  }
  func.func @transform_2(%arg0: i32, %arg1: memref<21xi32, #tpu.memory_space<smem>>) -> (i32, i32) {
    %c0_i32 = arith.constant 0 : i32
    %c0_i32_0 = arith.constant 0 : i32
    %c0_i32_1 = arith.constant 0 : i32
    return %c0_i32, %c0_i32_0 : i32, i32
  }
}

</mosaic_0001>

<bundles_post_ra>
// kernel: tree_lstm_states.1
= control target key start
LH: loop header
LB: loop body
LE: loop exit
PB: predicated region body
PF: predicated region fallthrough
CT: control target
= control target key end

     0   :  { %s417_s0 = inlined_call_operand.vmem [shape: s32[21], index: 0, kind: input, shape index: {}]   ;;  %s418_s1 = inlined_call_operand.vmem [shape: f32[7,128], index: 1, kind: input, shape index: {}]   ;;  %s419_s2 = inlined_call_operand.hbm [shape: f32[64,128], index: 2, kind: input, shape index: {}]   ;;  %s420_s3 = inlined_call_operand.vmem [shape: f32[8,64], index: 3, kind: output, shape index: {}]  }
   0x1   :  { %s8_s14 = sshll.u32 %s417_s0, 4  ;;  %s9_s14 = int_to_ptr.vmem [resolvable:$true] %s8_s14 }
   0x2   :  { %s294_s15 = scalar_lea.vmem %s9_s14, 16  ;;  %p299_p1 = scmp.lt.s32.totalorder %s9_s14, %s9_s14 }
   0x3   :  { %p295_p0 = scmp.ne.s32.totalorder %s9_s14, %s294_s15  ;;  %p300_p2 = scmp.lt.s32.totalorder %s294_s15, %s294_s15 }
   0x5   :  { %p301_p3 = por %p300_p2, %p299_p1 }
   0x7   :  { %p302_p4 = pnand %p301_p3, %p295_p0 }
   0x9   :  { %305 = shalt.err (!%p302_p4)  }
   0xa   :  { %s340_s16 = smov [#allocation3]  }
   0xb   :  { %11 = dma.vmem_to_smem %s9_s14, 16, %s340_s16, [#allocation2] }
   0xc   :  { %332 = dma.done.wait [#allocation2], 16 }
   0xd   :  { %333 = vsyncadd [#allocation2], 4294967280 }
   0xe   :  { %13 = sfence }
   0xf   :  { %14 = vsyncpa [#allocation5], 0  ;;  %s341_s17 = smov [#allocation4]   ;;  %s306_s0 = scalar_lea.hbm %s419_s2, 1024 }
  0x10   :  { %s22_s18 = sshll.u32 %s341_s17, 4  ;;  %p307_p5 = scmp.ne.s32.totalorder %s419_s2, %s306_s0  ;;  %s23_s18 = int_to_ptr.vmem [resolvable:$true] %s22_s18 }
  0x11   :  { %p310_p6 = scmp.lt.u32.totalorder %s306_s0, %s419_s2 }
  0x13   :  { %p312_p7 = pnand %p310_p6, %p307_p5 }
  0x15   :  { %315 = shalt.err (!%p312_p7)
}
  0x16   :  { %s316_s25 = scalar_lea.vmem %s23_s18, 1024  ;;  %p321_p9 = scmp.lt.s32.totalorder %s23_s18, %s23_s18 }
  0x17   :  { %p317_p8 = scmp.ne.s32.totalorder %s23_s18, %s316_s25  ;;  %p322_p10 = scmp.lt.s32.totalorder %s316_s25, %s316_s25 }
  0x19   :  { %p323_p11 = por %p322_p10, %p321_p9 }
  0x1b   :  { %p324_p12 = pnand %p323_p11, %p317_p8 }
  0x1d   :  { %327 = shalt.err (!%p324_p12)
}
  0x1e   :  { %s342_s26 = smov 128   ;;  %s343_s27 = smov 8  }
  0x1f   :  { %28 = dma.hbm_to_vmem [thread:$0]  %s419_s2, 1024, %s23_s18, [#allocation5], %s342_s26, %s342_s26, %s343_s27  }
  0x20   :  { %334 = dma.done.wait [#allocation5], 1024  }
  0x21   :  { %335 = vsyncadd [#allocation5], 4294966272  ;;  %vm32_vm0 = vcmask 516096   ;;  %v344_v0 = vmov 0.0   ;;  %s390_s5 = smov 0  }
  0x22   :  { %33 = vst.msk [vmem:[%s420_s3 + $0x7] sm:$0x1] %vm32_vm0, %v344_v0 }
  0x23 LB: > { %v62_v1 = vld [vmem:[#allocation4] sm:$0xff]  ;;  %v63_v2 = vld [vmem:[#allocation4 + $0x8] sm:$0xff]  ;;  %v64_v3 = vld [vmem:[#allocation4 + $0x10] sm:$0xff]  ;;  %v345_v4 = vmov 0.0|0.0   ;;  %vm346_vm1 = vmmov 0   ;;  %v347_v7 = vmov 0.0   ;;  %v162_v22 = vlaneseq  ;;  %s144_s22 = scalar_lea.vmem %s418_s1, %s338_s5  ;;  %s203_s27 = scalar_lea.vmem %s420_s3, %s338_s5  ;;  %s338_s5 = sphi %s390_s5, %s39_s5  }
  0x24   : > { %251 = vmatprep.subr.bf16.mxu0 %v345_v4  ;;  %v252_v5 = vpack.c.bf16 %v63_v2, %v62_v1  ;;  %v65_v6 = vld [vmem:[#allocation4 + $0x18] sm:$0xff]  ;;  %248 = vmatprep.mubr.msk.f32.mxu0 %vm346_vm1, %v347_v7  ;;  %s40_s2 = smul.u32 3, %s338_s5  ;;  %v66_v9 = vld [vmem:[#allocation4 + $0x20] sm:$0xff]  ;;  %v67_v10 = vld [vmem:[#allocation4 + $0x28] sm:$0xff]  ;;  %vm58_vm2 = vcmask 1040384   ;;  %vm60_vm3 = vcmask 1041408  }
  0x25   : > { %v255_v8 = vpack.c.bf16 %v65_v6, %v64_v3  ;;  %v258_v11 = vpack.c.bf16 %v67_v10, %v66_v9  ;;  %v68_v12 = vld [vmem:[#allocation4 + $0x30] sm:$0xff]  ;;  %v69_v13 = vld [vmem:[#allocation4 + $0x38] sm:$0xff]  ;;  %vm70_vm4 = vcmask 523264   ;;  %s348_s20 = smov 96   ;;  %v163_v23 = vshrl.u32 %v162_v22, 7  ;;  %s349_s23 = smov 64  }
  0x26   : > { %253 = vmatpush3.bf16.msra.mxu0 %v252_v5  ;;  %s41_s6 = sld [smem:[#allocation3 + %s40_s2]]  ;;  %s44_s7 = sadd.s32 1, %s40_s2  ;;  %v261_v14 = vpack.c.bf16 %v69_v13, %v68_v12  ;;  %v145_v25 = vld [vmem:[%s144_s22] sm:$0x1]  ;;  %vm146_vm5 = vcmask 780288   ;;  %vm182_vm6 = vcmask 1043200  }
  0x27   : > { %254 = vmatprep.subr.bf16.mxu0 %v345_v4  ;;  %s45_s8 = sld [smem:[#allocation3 + %s44_s7]]  ;;  %s48_s9 = sadd.s32 2, %s40_s2  ;;  %v164_v24 = vsub.s32 0, %v163_v23  ;;  %vm201_vm7 = vcmask 261120  }
  0x28   : > { %s49_s10 = sld [smem:[#allocation3 + %s48_s9]]  ;;  %s350_s24 = smov 32  }
  0x29   : > { %v165_v26 = vrot.slane %v145_v25, %v164_v24  ;;  %s39_s5 = sadd.s32 1, %s338_s5  }
  0x2a   : > { %256 = vmatpush3.bf16.msra.mxu0 %v255_v8  ;;  %p36_p13 = scmp.ge.s32.totalorder %s39_s5, 7  }
  0x2b   : > { %257 = vmatprep.subr.bf16.mxu0 %v345_v4 }
  0x2c   : > { %s42_s13 = scalar_lea.vmem %s420_s3, %s41_s6 }
  0x2d   : > { %s46_s16 = scalar_lea.vmem %s420_s3, %s45_s8  ;;  %v43_v15 = vld [vmem:[%s42_s13] sm:$0x1] }
  0x2e   : > { %259 = vmatpush3.bf16.msra.mxu0 %v258_v11  ;;  %v47_v16 = vld [vmem:[%s46_s16] sm:$0x1]  ;;  %s50_s19 = scalar_lea.vmem %s420_s3, %s49_s10 }
  0x2f   : > { %260 = vmatprep.subr.bf16.mxu0 %v345_v4  ;;  %v51_v17 = vld [vmem:[%s50_s19] sm:$0x1]  ;;  %v53_v18 = vrot.slane %v47_v16, 7 }
  0x30   : > { %v56_v19 = vrot.slane %v51_v17, 6 }
  0x31   : > { %v59_v20 = vsel %vm58_vm2, %v43_v15, %v53_v18 }
  0x32   : > { %262 = vmatpush3.bf16.msra.mxu0 %v261_v14  ;;  %v61_v21 = vsel %vm60_vm3, %v59_v20, %v56_v19 }
  0x33   : > { %178 = vrot.lane.b32.xlu0 %v61_v21, %s348_s20 }
  0x35   : > { %249 = vmatmul.mubr.msk.f32.vlgmr.msra.gmra.mrb[0].mxu0 %vm70_vm4, %v61_v21 }
  0xa5   : > { %v179_v42 = vpop.permute.xlu0 %178 }
 0x108   : > { %v140_v27 = vpop.f32.mrb[0].mxu0 }
 0x109   : > { %v147_v28 = vsel %vm146_vm5, %v140_v27, 0.0  ;;  %v166_v29 = vadd.f32 %v165_v26, %v140_v27  ;;  %v250_v30 = vpop.f32.mrb[1].mxu0 }
 0x10a   : > { %v148_v31 = vrot.slane %v147_v28, 4 }
 0x10b   : > { %v222_v32 = vmul.f32 -1.442695, %v166_v29 }
 0x10c   : > { %v149_v33 = vadd.f32 %v148_v31, %v147_v28 }
 0x10d   : > { %282 = vpow2.f32 %v222_v32 }
 0x10e   : > { %v150_v34 = vrot.slane %v149_v33, 2 }
 0x110   : > { %v151_v35 = vadd.f32 %v150_v34, %v149_v33 }
 0x112   : > { %v152_v36 = vrot.slane %v151_v35, 1 }
 0x114   : > { %v153_v37 = vadd.f32 %v152_v36, %v151_v35 }
 0x116   : > { %v154_v38 = vadd.f32 %v153_v37, %v145_v25 }
 0x117   : > { %v283_v39 = vpop.eup %282 }
 0x118   : > { %284 = vtanh.f32 %v154_v38  ;;  %v170_v40 = vadd.f32 1.0, %v283_v39  ;;  %v221_v52 = vmul.f32 -1.442695, %v154_v38 }
 0x11a   : > { %286 = vrcp.f32 %v170_v40 }
 0x11b   : > { %288 = vpow2.f32 %v221_v52 }
 0x122   : > { %v285_v41 = vpop.eup %284 }
 0x123   : > { %174 = vrot.lane.b32.xlu0 %v285_v41, %s349_s23 }
 0x124   : > { %v287_v43 = vpop.eup %286 }
 0x125   : > { %v181_v44 = vmul.f32 %v287_v43, %v179_v42  ;;  %v289_v53 = vpop.eup %288 }
 0x126   : > { %v158_v54 = vadd.f32 1.0, %v289_v53 }
 0x127   : > { %v183_v45 = vsel %vm182_vm6, %v181_v44, 0.0 }
 0x128   : > { %v184_v46 = vrot.slane %v183_v45, 4  ;;  %290 = vrcp.f32 %v158_v54 }
 0x12a   : > { %v185_v47 = vadd.f32 %v184_v46, %v183_v45 }
 0x12c   : > { %v186_v48 = vrot.slane %v185_v47, 2 }
 0x12e   : > { %v187_v49 = vadd.f32 %v186_v48, %v185_v47 }
 0x130   : > { %v188_v50 = vrot.slane %v187_v49, 1 }
 0x132   : > { %v189_v51 = vadd.f32 %v188_v50, %v187_v49  ;;  %v291_v56 = vpop.eup %290 }
 0x134   : > { %191 = vrot.lane.b32.xlu1 %v189_v51, %s350_s24 }
 0x195   : > { %v175_v55 = vpop.permute.xlu0 %174 }
 0x196   : > { %v177_v57 = vmul.f32 %v291_v56, %v175_v55 }
 0x1a6   : > { %v192_v58 = vpop.permute.xlu1 %191 }
 0x1a7   : > { %v194_v59 = vadd.f32 %v192_v58, %v177_v57 }
 0x1a9   : > { %292 = vtanh.f32 %v194_v59 }
 0x1b3   : > { %v293_v60 = vpop.eup %292 }
 0x1b4   : > { %197 = vrot.lane.b32.xlu1 %v293_v60, %s350_s24 }
 0x224   :  { %38 = sbr.rel (!%p36_p13) target bundleno = 35 (0x23), region = 44 }
 0x226   : > { %v198_v61 = vpop.permute.xlu1 %197 }
 0x227   : > { %v200_v62 = vmul.f32 %v291_v56, %v198_v61 }
 0x229   : > { %v202_v63 = vsel %vm201_vm7, %v194_v59, %v200_v62 }
 0x22a   : > { %204 = vst.msk [vmem:[%s203_s27] sm:$0x1] %vm32_vm0, %v202_v63 }
 0x22b   :  { %209 = vsyncpa [#allocation5], 1 }

</bundles_post_ra>
